<compile_context>
chip_gen: v7x
topology: tpu7x:2x2x1
jax: 0.10.0
libtpu: 0.0.40
codegen_flags: <defaults>
</compile_context>

<pallas_src>
import functools

import jax
import jax.numpy as jnp
from jax.experimental import pallas as pl
from jax.experimental.pallas import tpu as pltpu


_K0 = 0.7978845608028654          # sqrt(2/pi), same constant PyTorch uses
_K1 = 0.044715 * _K0              # folded: sqrt(2/pi) * 0.044715

_VMEM_LIMIT = 48 * 1024 * 1024    # explicit scoped-VMEM limit (fits v5e/v6e/v7x)
_VMEM_BUDGET = 44 * 1024 * 1024   # headroom under the limit for the fit check


def _gelu_tanh(h):
    # 0.5*h*(1+tanh(sqrt(2/pi)*(h+0.044715*h^3)))  rewritten with folded
    # constants and as 0.5*(h + h*t) to save ~2 VALU ops per element.
    t = jnp.tanh(h * (_K0 + _K1 * (h * h)))
    return 0.5 * (h + h * t)


def _gelu_compute_dtype():
    # bf16 VPU/EUP exist on v6e/v7x (2x packed elementwise); v5e and older are
    # f32-only, so keep the GELU chain in f32 there (it is free MXU filler).
    try:
        kind = jax.devices()[0].device_kind.lower()
    except Exception:  # pragma: no cover - defensive
        return jnp.float32
    if "v6" in kind or "v7" in kind:
        return jnp.bfloat16
    return jnp.float32


# ----------------------------------------------------------------------------
# Kernels
# ----------------------------------------------------------------------------
def _mlp_resident_kernel(x_ref, wfc_ref, bfc_ref, wproj_ref, bproj_ref, o_ref,
                         *, gelu_dtype):
    # x_ref:     (tm, C) bf16 | wfc_ref: (C, H) bf16 (resident)
    # bfc_ref:   (1, H)  f32  | wproj_ref: (H, C) bf16 (resident)
    # bproj_ref: (1, C)  f32  | o_ref: (tm, C)
    h = jnp.dot(x_ref[...], wfc_ref[...], preferred_element_type=jnp.float32)
    h = (h + bfc_ref[...]).astype(gelu_dtype)
    g = _gelu_tanh(h)
    out = jnp.dot(g.astype(wproj_ref.dtype), wproj_ref[...],
                  preferred_element_type=jnp.float32)
    o_ref[...] = (out + bproj_ref[...]).astype(o_ref.dtype)


def _mlp_stream_kernel(x_ref, wfc_ref, bfc_ref, wproj_ref, bproj_ref, o_ref,
                       acc_ref, *, gelu_dtype):
    # Streams the hidden axis: per step a (C, th) W_fc slice and a (th, C)
    # W_proj slice; GELU is elementwise per hidden unit so summing per-slice
    # c_proj contributions into the f32 accumulator is exact.
    k = pl.program_id(1)

    @pl.when(k == 0)
    def _():
        acc_ref[...] = jnp.zeros_like(acc_ref)

    h = jnp.dot(x_ref[...], wfc_ref[...], preferred_element_type=jnp.float32)
    h = (h + bfc_ref[...]).astype(gelu_dtype)
    g = _gelu_tanh(h)
    acc_ref[...] += jnp.dot(g.astype(wproj_ref.dtype), wproj_ref[...],
                            preferred_element_type=jnp.float32)

    @pl.when(k == pl.num_programs(1) - 1)
    def _():
        o_ref[...] = (acc_ref[...] + bproj_ref[...]).astype(o_ref.dtype)


# ----------------------------------------------------------------------------
# Wrapper
# ----------------------------------------------------------------------------
def _round_up(x, m):
    return (x + m - 1) // m * m


@functools.partial(jax.jit, static_argnames=("tm", "th", "force_stream"))
def mlp_forward(x, w_fc_t, b_fc, w_proj_t, b_proj, *, tm=512, th=1024,
                force_stream=False):
    """x: (B, T, C); weights pre-transposed (in, out). Returns (B, T, C)."""
    B, T, C = x.shape
    H = w_fc_t.shape[1]          # 4 * C
    M = B * T
    out_itemsize = jnp.dtype(x.dtype).itemsize
    gelu_dtype = _gelu_compute_dtype()

    def _clamp_tm(t):
        # bf16 packs 16 rows per sublane group -> clamp to a multiple of 16.
        t = max(16, min(t, _round_up(M, 16)))
        # v7x has 2 TensorCores: keep >=2 row tiles when there are enough rows
        # so the "parallel" axis can be megacore-sharded.
        if M >= 512 and _round_up(M, t) // t < 2:
            t = _round_up(-(-M // 2), 256)
        return t

    tm = _clamp_tm(tm)

    # Resident-weights fit check (double-buffered bf16 weights + x/out tiles +
    # (tm, H) intermediates + biases), conservative against v7x's 64 MiB VMEM.
    resident_bytes = (8 * C * H                      # 2x-buffered bf16 W_fc + W_proj
                      + 2 * tm * C * 2               # 2x-buffered bf16 x tile
                      + 2 * tm * C * out_itemsize    # 2x-buffered out tile
                      + tm * H * 8                   # f32 h + bf16 g intermediates
                      + (H + C) * 8)                 # biases
    use_resident = (resident_bytes <= _VMEM_BUDGET) and not force_stream

    if not use_resident:
        # Streaming path re-reads weights once per row tile: raise tm so
        # arithmetic intensity (~tm flop/byte) clears every chip's crossover.
        tm = _clamp_tm(max(tm, 1024))

    Mp = _round_up(M, tm)
    n_row = Mp // tm

    x2 = x.reshape(M, C)
    if Mp != M:
        x2 = jnp.pad(x2, ((0, Mp - M), (0, 0)))
    x_bf = x2.astype(jnp.bfloat16)
    bproj2 = b_proj.reshape(1, C).astype(jnp.float32)

    if use_resident:
        wfc_bf = w_fc_t.astype(jnp.bfloat16)
        wproj_bf = w_proj_t.astype(jnp.bfloat16)
        bfc2 = b_fc.reshape(1, H).astype(jnp.float32)

        cost = pl.CostEstimate(
            flops=4 * Mp * C * H,
            transcendentals=Mp * H,
            bytes_accessed=(x_bf.size * 2 + Mp * C * out_itemsize
                            + 4 * C * H + (H + C) * 4),
        )
        out2 = pl.pallas_call(
            functools.partial(_mlp_resident_kernel, gelu_dtype=gelu_dtype),
            out_shape=jax.ShapeDtypeStruct((Mp, C), x.dtype),
            grid_spec=pltpu.PrefetchScalarGridSpec(
                num_scalar_prefetch=0,
                grid=(n_row,),
                in_specs=[
                    pl.BlockSpec((tm, C), lambda i: (i, 0)),   # x row tile
                    pl.BlockSpec((C, H), lambda i: (0, 0)),    # W_fc^T resident
                    pl.BlockSpec((1, H), lambda i: (0, 0)),    # b_fc resident
                    pl.BlockSpec((H, C), lambda i: (0, 0)),    # W_proj^T resident
                    pl.BlockSpec((1, C), lambda i: (0, 0)),    # b_proj resident
                ],
                out_specs=pl.BlockSpec((tm, C), lambda i: (i, 0)),
            ),
            compiler_params=pltpu.CompilerParams(
                dimension_semantics=("parallel",),
                vmem_limit_bytes=_VMEM_LIMIT,
            ),
            cost_estimate=cost,
        )(x_bf, wfc_bf, bfc2, wproj_bf, bproj2)
    else:
        # Hidden tile: multiple of 128; pad H up to a multiple of th (padded
        # hidden units have zero bias and zero W_proj rows -> zero contribution).
        th = max(128, (min(th, _round_up(H, 128)) // 128) * 128)
        Hp = _round_up(H, th)
        wfc_p, bfc_p, wproj_p = w_fc_t, b_fc, w_proj_t
        if Hp != H:
            wfc_p = jnp.pad(w_fc_t, ((0, 0), (0, Hp - H)))
            bfc_p = jnp.pad(b_fc, ((0, Hp - H),))
            wproj_p = jnp.pad(w_proj_t, ((0, Hp - H), (0, 0)))
        wfc_bf = wfc_p.astype(jnp.bfloat16)
        wproj_bf = wproj_p.astype(jnp.bfloat16)
        bfc2 = bfc_p.reshape(1, Hp).astype(jnp.float32)
        n_h = Hp // th

        cost = pl.CostEstimate(
            flops=4 * Mp * C * Hp,
            transcendentals=Mp * Hp,
            bytes_accessed=(x_bf.size * 2 + Mp * C * out_itemsize
                            + n_row * 4 * C * Hp + (Hp + C) * 4),
        )
        # NOTE: at tm>=1024 the per-step weight DMA is well hidden by the MXU
        # work on all three generations; no extra buffering needed.
        out2 = pl.pallas_call(
            functools.partial(_mlp_stream_kernel, gelu_dtype=gelu_dtype),
            out_shape=jax.ShapeDtypeStruct((Mp, C), x.dtype),
            grid_spec=pltpu.PrefetchScalarGridSpec(
                num_scalar_prefetch=0,
                grid=(n_row, n_h),                      # H reduction innermost
                in_specs=[
                    pl.BlockSpec((tm, C), lambda i, k: (i, 0)),   # x row tile
                    pl.BlockSpec((C, th), lambda i, k: (0, k)),   # W_fc^T slice
                    pl.BlockSpec((1, th), lambda i, k: (0, k)),   # b_fc slice
                    pl.BlockSpec((th, C), lambda i, k: (k, 0)),   # W_proj^T slice
                    pl.BlockSpec((1, C), lambda i, k: (0, 0)),    # b_proj
                ],
                out_specs=pl.BlockSpec((tm, C), lambda i, k: (i, 0)),
                scratch_shapes=[pltpu.VMEM((tm, C), jnp.float32)],
            ),
            compiler_params=pltpu.CompilerParams(
                dimension_semantics=("parallel", "arbitrary"),
                vmem_limit_bytes=_VMEM_LIMIT,
            ),
            cost_estimate=cost,
        )(x_bf, wfc_bf, bfc2, wproj_bf, bproj2)

    if Mp != M:
        out2 = out2[:M]
    return out2.reshape(B, T, C)


# ----------------------------------------------------------------------------
# Params / reference / test
# ----------------------------------------------------------------------------
def init_mlp_params(key, n_embd, dtype=jnp.float32):
    """Deterministic init mirroring nn.Linear defaults (uniform +/-1/sqrt(fan_in))."""
    h = 4 * n_embd
    k1, k2, k3, k4 = jax.random.split(key, 4)
    bound_fc = 1.0 / (n_embd ** 0.5)
    bound_proj = 1.0 / (h ** 0.5)
    # stored already transposed: (in_features, out_features)
    w_fc_t = jax.random.uniform(k1, (n_embd, h), dtype, -bound_fc, bound_fc)
    b_fc = jax.random.uniform(k2, (h,), dtype, -bound_fc, bound_fc)
    w_proj_t = jax.random.uniform(k3, (h, n_embd), dtype, -bound_proj, bound_proj)
    b_proj = jax.random.uniform(k4, (n_embd,), dtype, -bound_proj, bound_proj)
    return w_fc_t, b_fc, w_proj_t, b_proj


def mlp_reference(x, w_fc_t, b_fc, w_proj_t, b_proj):
    # Pure f32 reference (kernel uses bf16 MXU operands -> compare loosely).
    h = x @ w_fc_t + b_fc
    g = 0.5 * h * (1.0 + jnp.tanh(_K0 * (h + 0.044715 * h ** 3)))
    return g @ w_proj_t + b_proj


if __name__ == "__main__":
    B, T, C = 2, 8, 32  # batch, seq, n_embd  (hidden = 4*C = 128)
    key = jax.random.PRNGKey(0)
    kx, kp = jax.random.split(key)

    x = jax.random.normal(kx, (B, T, C), jnp.float32)
    params = init_mlp_params(kp, C)
    ref = mlp_reference(x, *params)

    # Resident-weights path (default for GPT-2-class and smaller sizes).
    out = jax.block_until_ready(mlp_forward(x, *params))
    assert out.shape == (B, T, C)
    assert jnp.allclose(out, ref, atol=3e-2, rtol=3e-2), "resident path mismatch"

    # Streaming-H fallback path (exercised here explicitly for coverage).
    out_s = jax.block_until_ready(mlp_forward(x, *params, force_stream=True))
    assert jnp.allclose(out_s, ref, atol=3e-2, rtol=3e-2), "streaming path mismatch"

    print("KERNEL_OK")
</pallas_src>

<mosaic_0001>
module attributes {stable_mosaic.version = 11 : i64} {
  func.func @_mlp_resident_kernel(%arg0: i32, %arg1: memref<16x32xbf16, #tpu.memory_space<vmem>>, %arg2: memref<32x128xbf16, #tpu.memory_space<vmem>>, %arg3: memref<1x128xf32, #tpu.memory_space<vmem>>, %arg4: memref<128x32xbf16, #tpu.memory_space<vmem>>, %arg5: memref<1x32xf32, #tpu.memory_space<vmem>>, %arg6: memref<16x32xf32, #tpu.memory_space<vmem>>) attributes {dimension_semantics = [#tpu.dimension_semantics<parallel>], iteration_bounds = array<i64: 1>, scalar_prefetch = 0 : i64, scratch_operands = 0 : i64, tpu.core_type = #tpu.core_type<tc>, window_params = [{transform_indices = @transform_0, window_bounds = array<i64: 16, 32>}, {pipeline_mode = #tpu.pipeline_mode<synchronous>, transform_indices = @transform_1, window_bounds = array<i64: 32, 128>}, {pipeline_mode = #tpu.pipeline_mode<synchronous>, transform_indices = @transform_2, window_bounds = array<i64: 1, 128>}, {pipeline_mode = #tpu.pipeline_mode<synchronous>, transform_indices = @transform_3, window_bounds = array<i64: 128, 32>}, {pipeline_mode = #tpu.pipeline_mode<synchronous>, transform_indices = @transform_4, window_bounds = array<i64: 1, 32>}, {transform_indices = @transform_5, window_bounds = array<i64: 16, 32>}]} {
    %c0 = arith.constant 0 : index
    %c0_0 = arith.constant 0 : index
    %0 = vector.load %arg1[%c0, %c0_0] : memref<16x32xbf16, #tpu.memory_space<vmem>>, vector<16x32xbf16>
    %c0_1 = arith.constant 0 : index
    %c0_2 = arith.constant 0 : index
    %1 = vector.load %arg2[%c0_1, %c0_2] : memref<32x128xbf16, #tpu.memory_space<vmem>>, vector<32x128xbf16>
    %cst = arith.constant dense<0.000000e+00> : vector<16x128xf32>
    %2 = tpu.matmul %0, %1, %cst {dimension_numbers = #tpu.dot_dimension_numbers<[1], [0], [0], [1], [0, 0, 1, 1], [], []>} : vector<16x32xbf16>, vector<32x128xbf16>, vector<16x128xf32> -> vector<16x128xf32>
    %c0_3 = arith.constant 0 : index
    %c0_4 = arith.constant 0 : index
    %3 = vector.load %arg3[%c0_3, %c0_4] : memref<1x128xf32, #tpu.memory_space<vmem>>, vector<1x128xf32>
    %4 = vector.broadcast %3 : vector<1x128xf32> to vector<16x128xf32>
    %5 = arith.addf %2, %4 : vector<16x128xf32>
    %6 = arith.mulf %5, %5 : vector<16x128xf32>
    %cst_5 = arith.constant 0.0356774069 : f32
    %7 = vector.broadcast %cst_5 : f32 to vector<16x128xf32>
    %8 = arith.mulf %7, %6 : vector<16x128xf32>
    %cst_6 = arith.constant 0.797884583 : f32
    %9 = vector.broadcast %cst_6 : f32 to vector<16x128xf32>
    %10 = arith.addf %9, %8 : vector<16x128xf32>
    %11 = arith.mulf %5, %10 : vector<16x128xf32>
    %12 = math.tanh %11 : vector<16x128xf32>
    %13 = arith.mulf %5, %12 : vector<16x128xf32>
    %14 = arith.addf %5, %13 : vector<16x128xf32>
    %cst_7 = arith.constant 5.000000e-01 : f32
    %15 = vector.broadcast %cst_7 : f32 to vector<16x128xf32>
    %16 = arith.mulf %15, %14 : vector<16x128xf32>
    %17 = arith.truncf %16 : vector<16x128xf32> to vector<16x128xbf16>
    %c0_8 = arith.constant 0 : index
    %c0_9 = arith.constant 0 : index
    %18 = vector.load %arg4[%c0_8, %c0_9] : memref<128x32xbf16, #tpu.memory_space<vmem>>, vector<128x32xbf16>
    %cst_10 = arith.constant dense<0.000000e+00> : vector<16x32xf32>
    %19 = tpu.matmul %17, %18, %cst_10 {dimension_numbers = #tpu.dot_dimension_numbers<[1], [0], [0], [1], [0, 0, 1, 1], [], []>} : vector<16x128xbf16>, vector<128x32xbf16>, vector<16x32xf32> -> vector<16x32xf32>
    %c0_11 = arith.constant 0 : index
    %c0_12 = arith.constant 0 : index
    %20 = vector.load %arg5[%c0_11, %c0_12] : memref<1x32xf32, #tpu.memory_space<vmem>>, vector<1x32xf32>
    %21 = vector.broadcast %20 : vector<1x32xf32> to vector<16x32xf32>
    %22 = arith.addf %19, %21 : vector<16x32xf32>
    %c0_13 = arith.constant 0 : index
    %c0_14 = arith.constant 0 : index
    %23 = vector.load %arg6[%c0_13, %c0_14] : memref<16x32xf32, #tpu.memory_space<vmem>>, vector<16x32xf32>
    tpu.vector_store %arg6[%c0_13, %c0_14], %22 {strides = array<i32>} : memref<16x32xf32, #tpu.memory_space<vmem>>, vector<16x32xf32>,
    return
  }
  func.func @transform_0(%arg0: i32) -> (i32, i32) {
    %c0_i32 = arith.constant 0 : i32
    %c0_i32_0 = arith.constant 0 : i32
    return %arg0, %c0_i32 : i32, i32
  }
  func.func @transform_1(%arg0: i32) -> (i32, i32) {
    %c0_i32 = arith.constant 0 : i32
    %c0_i32_0 = arith.constant 0 : i32
    %c0_i32_1 = arith.constant 0 : i32
    return %c0_i32, %c0_i32_0 : i32, i32
  }
  func.func @transform_2(%arg0: i32) -> (i32, i32) {
    %c0_i32 = arith.constant 0 : i32
    %c0_i32_0 = arith.constant 0 : i32
    %c0_i32_1 = arith.constant 0 : i32
    return %c0_i32, %c0_i32_0 : i32, i32
  }
  func.func @transform_3(%arg0: i32) -> (i32, i32) {
    %c0_i32 = arith.constant 0 : i32
    %c0_i32_0 = arith.constant 0 : i32
    %c0_i32_1 = arith.constant 0 : i32
    return %c0_i32, %c0_i32_0 : i32, i32
  }
  func.func @transform_4(%arg0: i32) -> (i32, i32) {
    %c0_i32 = arith.constant 0 : i32
    %c0_i32_0 = arith.constant 0 : i32
    %c0_i32_1 = arith.constant 0 : i32
    return %c0_i32, %c0_i32_0 : i32, i32
  }
  func.func @transform_5(%arg0: i32) -> (i32, i32) {
    %c0_i32 = arith.constant 0 : i32
    %c0_i32_0 = arith.constant 0 : i32
    return %arg0, %c0_i32 : i32, i32
  }
}

</mosaic_0001>

<bundles_post_ra>
// kernel: mlp_forward.1
= control target key start
LH: loop header
LB: loop body
LE: loop exit
PB: predicated region body
PF: predicated region fallthrough
CT: control target
= control target key end

     0   :  { %v342_v1 = vmov 0.0   ;;  %vm343_vm0 = vmmov 0   ;;  %vm52_vm1 = vcmask 261120   ;;  %s431_s0 = inlined_call_operand.vmem [shape: bf16[16,32], index: 0, kind: input, shape index: {}]   ;;  %s432_s1 = inlined_call_operand.vmem [shape: bf16[32,128], index: 1, kind: input, shape index: {}]   ;;  %s433_s2 = inlined_call_operand.vmem [shape: f32[1,128], index: 2, kind: input, shape index: {}]   ;;  %s434_s3 = inlined_call_operand.vmem [shape: bf16[128,32], index: 3, kind: input, shape index: {}]   ;;  %s435_s4 = inlined_call_operand.vmem [shape: f32[1,32], index: 4, kind: input, shape index: {}]   ;;  %s436_s5 = inlined_call_operand.hbm [shape: f32[16,32], index: 5, kind: output, shape index: {}]  }
   0x1   :  { %v303_v0 = vld [vmem:[%s432_s1] sm:$0xff]   ;;  %270 = vmatprep.subr.bf16.mxu0 %v342_v1  ;;  %278 = vmatprep.subr.bf16.mxu1 %v342_v1  ;;  %v304_v2 = vld [vmem:[%s432_s1 + $0x8] sm:$0xff]  }
   0x2   :  { %271 = vmatpush3.bf16.msra.mxu0 %v303_v0  ;;  %274 = vmatprep.mubr.msk.bf16.mxu0 %vm343_vm0, %v342_v1  ;;  %v305_v3 = vld [vmem:[%s431_s0] sm:$0xff]  }
   0x3   :  { %272 = vmatprep.subr.bf16.mxu0 %v342_v1  ;;  %294 = vmatprep.mubr.msk.bf16.mxu1 %vm343_vm0, %v342_v1 }
   0x6   :  { %273 = vmatpush3.bf16.msra.mxu0 %v304_v2 }
   0x7   :  { %10 = vsyncpa [#allocation3], 0  ;;  %v306_v4 = vld [vmem:[%s434_s3] sm:$0xff]   ;;  %v307_v5 = vld [vmem:[%s434_s3 + $0x8] sm:$0xff]   ;;  %s344_s15 = smov [#allocation2]  }
   0x8   :  { %279 = vmatpush3.bf16.msra.mxu1 %v306_v4  ;;  %v308_v6 = vld [vmem:[%s434_s3 + $0x10] sm:$0xff]   ;;  %v309_v7 = vld [vmem:[%s434_s3 + $0x18] sm:$0xff]   ;;  %v310_v8 = vld [vmem:[%s434_s3 + $0x20] sm:$0xff]   ;;  %s233_s16 = sshll.u32 %s344_s15, 4  ;;  %s234_s16 = int_to_ptr.vmem [resolvable:$true] %s233_s16 }
   0x9   :  { %275 = vmatmul.mubr.msk.bf16.vlgmr.msra.gmra.mrb[0].mxu0 %vm52_vm1, %v305_v3  ;;  %280 = vmatprep.subr.bf16.mxu1 %v342_v1  ;;  %v311_v9 = vld [vmem:[%s434_s3 + $0x28] sm:$0xff]   ;;  %v312_v10 = vld [vmem:[%s434_s3 + $0x30] sm:$0xff]   ;;  %v313_v11 = vld [vmem:[%s434_s3 + $0x38] sm:$0xff]   ;;  %s318_s17 = scalar_lea.vmem %s234_s16, 256  ;;  %p323_p1 = scmp.lt.s32.totalorder %s234_s16, %s234_s16 }
   0xa   :  { %v244_v12 = vld [vmem:[%s433_s2] ss:$0 sm:$0xff]  ;;  %p319_p0 = scmp.ne.s32.totalorder %s234_s16, %s318_s17  ;;  %p324_p2 = scmp.lt.s32.totalorder %s318_s17, %s318_s17 }
   0xb   :  { %v249_v36 = vld [vmem:[%s435_s4] ss:$0 sm:$0xff] }
   0xc   :  { %281 = vmatpush3.bf16.msra.mxu1 %v307_v5  ;;  %p325_p3 = por %p324_p2, %p323_p1 }
   0xd   :  { %282 = vmatprep.subr.bf16.mxu1 %v342_v1 }
   0xe   :  { %p326_p4 = pnand %p325_p3, %p319_p0 }
  0x10   :  { %283 = vmatpush3.bf16.msra.mxu1 %v308_v6 }
  0x11   :  { %284 = vmatprep.subr.bf16.mxu1 %v342_v1 }
  0x14   :  { %285 = vmatpush3.bf16.msra.mxu1 %v309_v7 }
  0x15   :  { %286 = vmatprep.subr.bf16.mxu1 %v342_v1 }
  0x18   :  { %287 = vmatpush3.bf16.msra.mxu1 %v310_v8 }
  0x19   :  { %288 = vmatprep.subr.bf16.mxu1 %v342_v1 }
  0x1c   :  { %289 = vmatpush3.bf16.msra.mxu1 %v311_v9 }
  0x1d   :  { %290 = vmatprep.subr.bf16.mxu1 %v342_v1 }
  0x20   :  { %291 = vmatpush3.bf16.msra.mxu1 %v312_v10 }
  0x21   :  { %292 = vmatprep.subr.bf16.mxu1 %v342_v1 }
  0x24   :  { %293 = vmatpush3.bf16.msra.mxu1 %v313_v11 }
  0xdc   :  { %v90_v13 = vpop.f32.mrb[0].mxu0 }
  0xdd   :  { %v91_v14 = vadd.f32 %v244_v12, %v90_v13  ;;  %v276_v15 = vpop.f32.mrb[1].mxu0 }
  0xde   :  { %v93_v16 = vpop.f32.mrb[2].mxu0 }
  0xdf   :  { %v97_v17 = vmul.f32 %v91_v14, %v91_v14  ;;  %v94_v18 = vadd.f32 %v244_v12, %v93_v16  ;;  %v277_v19 = vpop.f32.mrb[3].mxu0 }
  0xe1   :  { %v99_v20 = vmul.f32 0.035677407, %v97_v17  ;;  %v98_v21 = vmul.f32 %v94_v18, %v94_v18 }
  0xe3   :  { %v101_v22 = vadd.f32 0.7978846, %v99_v20  ;;  %v100_v23 = vmul.f32 0.035677407, %v98_v21 }
  0xe5   :  { %v103_v24 = vmul.f32 %v101_v22, %v91_v14  ;;  %v102_v25 = vadd.f32 0.7978846, %v100_v23 }
  0xe7   :  { %314 = vtanh.f32 %v103_v24  ;;  %v104_v26 = vmul.f32 %v102_v25, %v94_v18 }
  0xe9   :  { %316 = vtanh.f32 %v104_v26 }
  0xf1   :  { %v315_v27 = vpop.eup %314 }
  0xf2   :  { %v107_v28 = vmul.f32 %v315_v27, %v91_v14 }
  0xf3   :  { %v317_v29 = vpop.eup %316 }
  0xf4   :  { %v108_v30 = vmul.f32 %v317_v29, %v94_v18  ;;  %v109_v31 = vadd.f32 %v107_v28, %v91_v14 }
  0xf6   :  { %v110_v32 = vadd.f32 %v108_v30, %v94_v18  ;;  %v111_v33 = vmul.f32 0.5, %v109_v31 }
  0xf8   :  { %v112_v34 = vmul.f32 0.5, %v110_v32 }
  0xfa   :  { %v113_v35 = vpack.c.bf16 %v112_v34, %v111_v33 }
  0xfc   :  { %295 = vmatmul.mubr.bf16.vlgmr.msra.gmra.mrb[0].mxu1 %v113_v35 }
 0x1cf   :  { %v219_v37 = vpop.f32.mrb[0].mxu1 }
 0x1d0   :  { %v220_v38 = vadd.f32 %v249_v36, %v219_v37  ;;  %v296_v39 = vpop.f32.mrb[1].mxu1 }
 0x1d1   :  { %v222_v40 = vpop.f32.mrb[2].mxu1 }
 0x1d2   :  { %226 = vst.msk [vmem:[#allocation2] sm:$0xff] %vm52_vm1, %v220_v38  ;;  %v223_v41 = vadd.f32 %v249_v36, %v222_v40  ;;  %v297_v42 = vpop.f32.mrb[3].mxu1 }
 0x1d4   :  { %227 = vst.msk [vmem:[#allocation2 + $0x8] sm:$0xff] %vm52_vm1, %v223_v41 }
 0x1d5   :  { %329 = shalt.err (!%p326_p4)
}
 0x1d6   :  { %s330_s19 = scalar_lea.hbm %s436_s5, 256 }
 0x1d7   :  { %p331_p5 = scmp.ne.s32.totalorder %s436_s5, %s330_s19  ;;  %p334_p6 = scmp.lt.u32.totalorder %s330_s19, %s436_s5 }
 0x1d9   :  { %p336_p7 = pnand %p334_p6, %p331_p5 }
 0x1db   :  { %339 = shalt.err (!%p336_p7)
}
 0x1dc   :  { %s345_s24 = smov 128   ;;  %s346_s25 = smov 8  }
 0x1dd   :  { %239 = dma.vmem_to_hbm [thread:$0]  %s234_s16, 256, %s436_s5, [#allocation3], %s345_s24, %s345_s24, %s346_s25  }
 0x1de   :  { %340 = dma.done.wait [#allocation3], 256  }
 0x1df   :  { %341 = vsyncadd [#allocation3], 4294967040 }
 0x1e0   :  { %243 = vsyncpa [#allocation3], 1 }

</bundles_post_ra>
